<compile_context>
chip_gen: v6e
topology: v6e:2x2x1
jax: 0.10.0
libtpu: 0.0.40
codegen_flags: <defaults>
</compile_context>

<pallas_src>
import jax
import jax.numpy as jnp
from jax.experimental import pallas as pl
from jax.experimental.pallas import tpu as pltpu


def _mlp_kernel(lat_ref, a_ref, w1l_ref, w1a_ref, b1_ref,
                w2_ref, b2_ref, w3_ref, b3_ref, o_ref):
    # fc1: the torch.cat((latent, a), -1) is folded into two small dots (no HBM concat).
    # Inputs arrive as f32 and are quantized to bf16 here (VPU op on VMEM data only).
    lat = lat_ref[...].astype(w1l_ref.dtype)
    act = a_ref[...].astype(w1a_ref.dtype)
    h1 = (jnp.dot(lat, w1l_ref[...], preferred_element_type=jnp.float32)
          + jnp.dot(act, w1a_ref[...], preferred_element_type=jnp.float32)
          + b1_ref[...])
    h1 = jnp.maximum(h1, 0.0)                                   # relu(fc1), f32

    # fc2 / fc3: K = 64, bf16 operands with f32 MXU accumulation.
    h2 = jnp.dot(h1.astype(w2_ref.dtype), w2_ref[...],
                 preferred_element_type=jnp.float32) + b2_ref[...]
    h2 = jnp.maximum(h2, 0.0)                                   # relu(fc2), f32

    out = jnp.dot(h2.astype(w3_ref.dtype), w3_ref[...],
                  preferred_element_type=jnp.float32) + b3_ref[...]
    o_ref[...] = out.astype(o_ref.dtype)                        # fc3, narrow (tb, latent_dim)


def prepare_params(params, latent_dim, compute_dtype=jnp.bfloat16):
    """One-time parameter prep (hoisted out of the forward): split fc1's weight so the
    (latent, a) concat never materializes, cast weights to the MXU compute dtype."""
    w1, b1, w2, b2, w3, b3 = params
    return (w1[:latent_dim].astype(compute_dtype),   # fc1 weight, latent part (latent_dim, 64)
            w1[latent_dim:].astype(compute_dtype),   # fc1 weight, action part (a_dim, 64)
            b1.reshape(1, -1).astype(jnp.float32),
            w2.astype(compute_dtype),                # (64, 64)
            b2.reshape(1, -1).astype(jnp.float32),
            w3.astype(compute_dtype),                # (64, latent_dim)
            b3.reshape(1, -1).astype(jnp.float32))


def transition_model_forward(latent, a, prepared_params, *, block_batch=4096):
    """latent: [B, latent_dim] f32, a: [B, a_dim] f32 -> out_latent: [B, latent_dim] f32."""
    w1_l, w1_a, b1, w2, b2, w3, b3 = prepared_params
    B, latent_dim = latent.shape
    a_dim = a.shape[1]
    out_dim = w3.shape[1]

    # Batch tile: large to amortize the ~0.35us/step grid overhead and issue big DMAs,
    # but capped so double-buffered lane-padded tiles stay well inside VMEM (v7x too).
    MAX_TB = 8192
    tb = min(block_batch, B, MAX_TB)
    if B > 16:
        tb = min(tb, (B + 1) // 2)        # guarantee >= 2 grid steps (v7x: both TCs busy)
    if tb != B:
        tb = max(8, (tb // 8) * 8)        # (8, 128) sublane rule for partial blocks
    grid = (pl.cdiv(B, tb),)

    # VMEM budget: double-buffered latent / a / out tiles (each lane-padded to 128, f32)
    # plus slack for the tiny resident weights and compiler scratch.  Capped at 28 MiB.
    vmem_bytes = 2 * 3 * tb * 128 * 4 + (4 << 20)
    vmem_bytes = int(min(max(vmem_bytes, 16 << 20), 28 << 20))

    def batch_spec(feat):
        return pl.BlockSpec((tb, feat), lambda i: (i, 0))

    def resident_spec(shape):
        # Constant block index -> Pallas keeps the block VMEM-resident across grid steps.
        return pl.BlockSpec(shape, lambda i: (0, 0))

    return pl.pallas_call(
        _mlp_kernel,
        out_shape=jax.ShapeDtypeStruct((B, out_dim), jnp.float32),
        grid=grid,
        in_specs=[
            batch_spec(latent_dim),            # latent tile (f32)
            batch_spec(a_dim),                 # action tile (f32)
            resident_spec(w1_l.shape),         # fc1 weight, latent part (bf16)
            resident_spec(w1_a.shape),         # fc1 weight, action part (bf16)
            resident_spec(b1.shape),           # fc1 bias (f32)
            resident_spec(w2.shape),           # fc2 weight (bf16)
            resident_spec(b2.shape),           # fc2 bias (f32)
            resident_spec(w3.shape),           # fc3 weight (bf16, narrow)
            resident_spec(b3.shape),           # fc3 bias (f32, narrow)
        ],
        out_specs=pl.BlockSpec((tb, out_dim), lambda i: (i, 0)),
        compiler_params=pltpu.CompilerParams(
            dimension_semantics=("parallel",),
            vmem_limit_bytes=vmem_bytes),
    )(latent, a, w1_l, w1_a, b1, w2, b2, w3, b3)


def init_params(key, latent_dim=4):
    """Deterministic init matching nn.Linear shapes (weights stored (in, out))."""
    def linear(key, fan_in, fan_out):
        kw, kb = jax.random.split(key)
        bound = 1.0 / jnp.sqrt(fan_in)
        w = jax.random.uniform(kw, (fan_in, fan_out), jnp.float32, -bound, bound)
        b = jax.random.uniform(kb, (1, fan_out), jnp.float32, -bound, bound)
        return w, b

    k1, k2, k3 = jax.random.split(key, 3)
    w1, b1 = linear(k1, latent_dim + 3, 64)   # fc1: (latent_dim+3) -> 64
    w2, b2 = linear(k2, 64, 64)               # fc2: 64 -> 64
    w3, b3 = linear(k3, 64, latent_dim)       # fc3: 64 -> latent_dim
    return (w1, b1, w2, b2, w3, b3)


def _reference(latent, a, params, compute_dtype=jnp.bfloat16):
    """Plain-JAX reference replicating the kernel's bf16 quantization points."""
    w1, b1, w2, b2, w3, b3 = params
    q = lambda t: t.astype(compute_dtype).astype(jnp.float32)
    hp = jax.lax.Precision.HIGHEST
    x = jnp.concatenate([q(latent), q(a)], axis=-1)
    h = jnp.maximum(jnp.dot(x, q(w1), precision=hp) + b1, 0.0)
    h = jnp.maximum(jnp.dot(q(h), q(w2), precision=hp) + b2, 0.0)
    return jnp.dot(q(h), q(w3), precision=hp) + b3


if __name__ == "__main__":
    latent_dim = 4
    batch = 8

    key = jax.random.PRNGKey(0)
    kp, kl, ka = jax.random.split(key, 3)

    params = init_params(kp, latent_dim=latent_dim)
    prepared = prepare_params(params, latent_dim)      # one-time param prep

    latent = jax.random.normal(kl, (batch, latent_dim), jnp.float32)
    a = jax.random.normal(ka, (batch, 3), jnp.float32)

    # Small run (single grid step).
    out = transition_model_forward(latent, a, prepared)
    out = jax.block_until_ready(out)
    ref = _reference(latent, a, params)
    assert out.shape == (batch, latent_dim)
    assert jnp.allclose(out, ref, atol=1e-2, rtol=1e-2), \
        float(jnp.max(jnp.abs(out - ref)))

    # Larger run exercising the batch grid + VMEM-resident weights (3 grid steps).
    kl2, ka2 = jax.random.split(jax.random.PRNGKey(1))
    latent2 = jax.random.normal(kl2, (192, latent_dim), jnp.float32)
    a2 = jax.random.normal(ka2, (192, 3), jnp.float32)
    out2 = transition_model_forward(latent2, a2, prepared, block_batch=64)
    out2 = jax.block_until_ready(out2)
    ref2 = _reference(latent2, a2, params)
    assert out2.shape == (192, latent_dim)
    assert jnp.allclose(out2, ref2, atol=1e-2, rtol=1e-2), \
        float(jnp.max(jnp.abs(out2 - ref2)))

    print("KERNEL_OK")
</pallas_src>

<mosaic_0001>
module attributes {stable_mosaic.version = 11 : i64} {
  func.func @_mlp_kernel(%arg0: i32, %arg1: memref<8x4xf32, #tpu.memory_space<vmem>>, %arg2: memref<8x3xf32, #tpu.memory_space<vmem>>, %arg3: memref<4x64xbf16, #tpu.memory_space<vmem>>, %arg4: memref<3x64xbf16, #tpu.memory_space<vmem>>, %arg5: memref<1x64xf32, #tpu.memory_space<vmem>>, %arg6: memref<64x64xbf16, #tpu.memory_space<vmem>>, %arg7: memref<1x64xf32, #tpu.memory_space<vmem>>, %arg8: memref<64x4xbf16, #tpu.memory_space<vmem>>, %arg9: memref<1x4xf32, #tpu.memory_space<vmem>>, %arg10: memref<8x4xf32, #tpu.memory_space<vmem>>) attributes {dimension_semantics = [#tpu.dimension_semantics<parallel>], iteration_bounds = array<i64: 1>, scalar_prefetch = 0 : i64, scratch_operands = 0 : i64, tpu.core_type = #tpu.core_type<tc>, window_params = [{transform_indices = @transform_0, window_bounds = array<i64: 8, 4>}, {transform_indices = @transform_1, window_bounds = array<i64: 8, 3>}, {pipeline_mode = #tpu.pipeline_mode<synchronous>, transform_indices = @transform_2, window_bounds = array<i64: 4, 64>}, {pipeline_mode = #tpu.pipeline_mode<synchronous>, transform_indices = @transform_3, window_bounds = array<i64: 3, 64>}, {pipeline_mode = #tpu.pipeline_mode<synchronous>, transform_indices = @transform_4, window_bounds = array<i64: 1, 64>}, {pipeline_mode = #tpu.pipeline_mode<synchronous>, transform_indices = @transform_5, window_bounds = array<i64: 64, 64>}, {pipeline_mode = #tpu.pipeline_mode<synchronous>, transform_indices = @transform_6, window_bounds = array<i64: 1, 64>}, {pipeline_mode = #tpu.pipeline_mode<synchronous>, transform_indices = @transform_7, window_bounds = array<i64: 64, 4>}, {pipeline_mode = #tpu.pipeline_mode<synchronous>, transform_indices = @transform_8, window_bounds = array<i64: 1, 4>}, {transform_indices = @transform_9, window_bounds = array<i64: 8, 4>}]} {
    %c0 = arith.constant 0 : index
    %c0_0 = arith.constant 0 : index
    %0 = vector.load %arg1[%c0, %c0_0] : memref<8x4xf32, #tpu.memory_space<vmem>>, vector<8x4xf32>
    %1 = arith.truncf %0 : vector<8x4xf32> to vector<8x4xbf16>
    %c0_1 = arith.constant 0 : index
    %c0_2 = arith.constant 0 : index
    %2 = vector.load %arg2[%c0_1, %c0_2] : memref<8x3xf32, #tpu.memory_space<vmem>>, vector<8x3xf32>
    %3 = arith.truncf %2 : vector<8x3xf32> to vector<8x3xbf16>
    %c0_3 = arith.constant 0 : index
    %c0_4 = arith.constant 0 : index
    %4 = vector.load %arg3[%c0_3, %c0_4] : memref<4x64xbf16, #tpu.memory_space<vmem>>, vector<4x64xbf16>
    %cst = arith.constant dense<0.000000e+00> : vector<8x64xf32>
    %5 = tpu.matmul %1, %4, %cst {dimension_numbers = #tpu.dot_dimension_numbers<[1], [0], [0], [1], [0, 0, 1, 1], [], []>} : vector<8x4xbf16>, vector<4x64xbf16>, vector<8x64xf32> -> vector<8x64xf32>
    %c0_5 = arith.constant 0 : index
    %c0_6 = arith.constant 0 : index
    %6 = vector.load %arg4[%c0_5, %c0_6] : memref<3x64xbf16, #tpu.memory_space<vmem>>, vector<3x64xbf16>
    %cst_7 = arith.constant dense<0.000000e+00> : vector<8x64xf32>
    %7 = tpu.matmul %3, %6, %cst_7 {dimension_numbers = #tpu.dot_dimension_numbers<[1], [0], [0], [1], [0, 0, 1, 1], [], []>} : vector<8x3xbf16>, vector<3x64xbf16>, vector<8x64xf32> -> vector<8x64xf32>
    %8 = arith.addf %5, %7 : vector<8x64xf32>
    %c0_8 = arith.constant 0 : index
    %c0_9 = arith.constant 0 : index
    %9 = vector.load %arg5[%c0_8, %c0_9] : memref<1x64xf32, #tpu.memory_space<vmem>>, vector<1x64xf32>
    %10 = vector.broadcast %9 : vector<1x64xf32> to vector<8x64xf32>
    %11 = arith.addf %8, %10 : vector<8x64xf32>
    %cst_10 = arith.constant 0.000000e+00 : f32
    %12 = vector.broadcast %cst_10 : f32 to vector<8x64xf32>
    %13 = arith.maximumf %11, %12 : vector<8x64xf32>
    %14 = arith.truncf %13 : vector<8x64xf32> to vector<8x64xbf16>
    %c0_11 = arith.constant 0 : index
    %c0_12 = arith.constant 0 : index
    %15 = vector.load %arg6[%c0_11, %c0_12] : memref<64x64xbf16, #tpu.memory_space<vmem>>, vector<64x64xbf16>
    %cst_13 = arith.constant dense<0.000000e+00> : vector<8x64xf32>
    %16 = tpu.matmul %14, %15, %cst_13 {dimension_numbers = #tpu.dot_dimension_numbers<[1], [0], [0], [1], [0, 0, 1, 1], [], []>} : vector<8x64xbf16>, vector<64x64xbf16>, vector<8x64xf32> -> vector<8x64xf32>
    %c0_14 = arith.constant 0 : index
    %c0_15 = arith.constant 0 : index
    %17 = vector.load %arg7[%c0_14, %c0_15] : memref<1x64xf32, #tpu.memory_space<vmem>>, vector<1x64xf32>
    %18 = vector.broadcast %17 : vector<1x64xf32> to vector<8x64xf32>
    %19 = arith.addf %16, %18 : vector<8x64xf32>
    %cst_16 = arith.constant 0.000000e+00 : f32
    %20 = vector.broadcast %cst_16 : f32 to vector<8x64xf32>
    %21 = arith.maximumf %19, %20 : vector<8x64xf32>
    %22 = arith.truncf %21 : vector<8x64xf32> to vector<8x64xbf16>
    %c0_17 = arith.constant 0 : index
    %c0_18 = arith.constant 0 : index
    %23 = vector.load %arg8[%c0_17, %c0_18] : memref<64x4xbf16, #tpu.memory_space<vmem>>, vector<64x4xbf16>
    %cst_19 = arith.constant dense<0.000000e+00> : vector<8x4xf32>
    %24 = tpu.matmul %22, %23, %cst_19 {dimension_numbers = #tpu.dot_dimension_numbers<[1], [0], [0], [1], [0, 0, 1, 1], [], []>} : vector<8x64xbf16>, vector<64x4xbf16>, vector<8x4xf32> -> vector<8x4xf32>
    %c0_20 = arith.constant 0 : index
    %c0_21 = arith.constant 0 : index
    %25 = vector.load %arg9[%c0_20, %c0_21] : memref<1x4xf32, #tpu.memory_space<vmem>>, vector<1x4xf32>
    %26 = vector.broadcast %25 : vector<1x4xf32> to vector<8x4xf32>
    %27 = arith.addf %24, %26 : vector<8x4xf32>
    %c0_22 = arith.constant 0 : index
    %c0_23 = arith.constant 0 : index
    %28 = vector.load %arg10[%c0_22, %c0_23] : memref<8x4xf32, #tpu.memory_space<vmem>>, vector<8x4xf32>
    tpu.vector_store %arg10[%c0_22, %c0_23], %27 {strides = array<i32>} : memref<8x4xf32, #tpu.memory_space<vmem>>, vector<8x4xf32>,
    return
  }
  func.func @transform_0(%arg0: i32) -> (i32, i32) {
    %c0_i32 = arith.constant 0 : i32
    %c0_i32_0 = arith.constant 0 : i32
    return %arg0, %c0_i32 : i32, i32
  }
  func.func @transform_1(%arg0: i32) -> (i32, i32) {
    %c0_i32 = arith.constant 0 : i32
    %c0_i32_0 = arith.constant 0 : i32
    return %arg0, %c0_i32 : i32, i32
  }
  func.func @transform_2(%arg0: i32) -> (i32, i32) {
    %c0_i32 = arith.constant 0 : i32
    %c0_i32_0 = arith.constant 0 : i32
    %c0_i32_1 = arith.constant 0 : i32
    return %c0_i32, %c0_i32_0 : i32, i32
  }
  func.func @transform_3(%arg0: i32) -> (i32, i32) {
    %c0_i32 = arith.constant 0 : i32
    %c0_i32_0 = arith.constant 0 : i32
    %c0_i32_1 = arith.constant 0 : i32
    return %c0_i32, %c0_i32_0 : i32, i32
  }
  func.func @transform_4(%arg0: i32) -> (i32, i32) {
    %c0_i32 = arith.constant 0 : i32
    %c0_i32_0 = arith.constant 0 : i32
    %c0_i32_1 = arith.constant 0 : i32
    return %c0_i32, %c0_i32_0 : i32, i32
  }
  func.func @transform_5(%arg0: i32) -> (i32, i32) {
    %c0_i32 = arith.constant 0 : i32
    %c0_i32_0 = arith.constant 0 : i32
    %c0_i32_1 = arith.constant 0 : i32
    return %c0_i32, %c0_i32_0 : i32, i32
  }
  func.func @transform_6(%arg0: i32) -> (i32, i32) {
    %c0_i32 = arith.constant 0 : i32
    %c0_i32_0 = arith.constant 0 : i32
    %c0_i32_1 = arith.constant 0 : i32
    return %c0_i32, %c0_i32_0 : i32, i32
  }
  func.func @transform_7(%arg0: i32) -> (i32, i32) {
    %c0_i32 = arith.constant 0 : i32
    %c0_i32_0 = arith.constant 0 : i32
    %c0_i32_1 = arith.constant 0 : i32
    return %c0_i32, %c0_i32_0 : i32, i32
  }
  func.func @transform_8(%arg0: i32) -> (i32, i32) {
    %c0_i32 = arith.constant 0 : i32
    %c0_i32_0 = arith.constant 0 : i32
    %c0_i32_1 = arith.constant 0 : i32
    return %c0_i32, %c0_i32_0 : i32, i32
  }
  func.func @transform_9(%arg0: i32) -> (i32, i32) {
    %c0_i32 = arith.constant 0 : i32
    %c0_i32_0 = arith.constant 0 : i32
    return %arg0, %c0_i32 : i32, i32
  }
}

</mosaic_0001>

<bundles_post_ra>
// kernel: tpu_custom_call.1
= control target key start
LH: loop header
LB: loop body
LE: loop exit
PB: predicated region body
PF: predicated region fallthrough
CT: control target
= control target key end

     0   :  { %vm44_vm0 = vcmask 1041408   ;;  %vm43_vm1 = vcmask 1040384   ;;  %v395_v0 = vmov 0.0   ;;  %v396_v3 = vmov 65535   ;;  %s504_s2 = inlined_call_operand.vmem [shape: bf16[4,64], index: 2, kind: input, shape index: {}]   ;;  %s505_s3 = inlined_call_operand.vmem [shape: bf16[3,64], index: 3, kind: input, shape index: {}]   ;;  %s506_s0 = inlined_call_operand.vmem [shape: f32[8,4], index: 0, kind: input, shape index: {}]   ;;  %s507_s1 = inlined_call_operand.vmem [shape: f32[8,3], index: 1, kind: input, shape index: {}]   ;;  %s508_s5 = inlined_call_operand.vmem [shape: bf16[64,64], index: 5, kind: input, shape index: {}]   ;;  %s509_s7 = inlined_call_operand.vmem [shape: bf16[64,4], index: 7, kind: input, shape index: {}]   ;;  %s510_s4 = inlined_call_operand.vmem [shape: f32[1,64], index: 4, kind: input, shape index: {}]   ;;  %s511_s6 = inlined_call_operand.vmem [shape: f32[1,64], index: 6, kind: input, shape index: {}]   ;;  %s512_s8 = inlined_call_operand.vmem [shape: f32[1,4], index: 8, kind: input, shape index: {}]   ;;  %s513_s9 = inlined_call_operand.vmem [shape: f32[8,4], index: 9, kind: output, shape index: {}]  }
   0x1   :  { %354 = vmatprep.subr.bf16.mxu1 %v395_v0  ;;  %v37_v1 = vld [vmem:[%s504_s2] sm:$0x3]  ;;  %348 = vmatprep.subr.bf16.mxu0 %v395_v0  ;;  %v45_v4 = vsel %vm43_vm1, 4294967295, %v396_v3  ;;  %vm397_vm2 = vmmov 0   ;;  %vm90_vm3 = vcmask 31744   ;;  %vm39_vm4 = vcmask 23552  }
   0x2   :  { %v38_v2 = vld [vmem:[%s505_s3] sm:$0x3]  ;;  %v95_v5 = vsel %vm44_vm0, %v37_v1, 0  ;;  %v46_v6 = vsel %vm44_vm0, %v45_v4, 0  ;;  %356 = vmatprep.mubr.msk.bf16.mxu1 %vm397_vm2, %v395_v0  ;;  %350 = vmatprep.mubr.msk.bf16.mxu0 %vm397_vm2, %v395_v0  ;;  %v387_v11 = vld [vmem:[%s508_s5 + $0x18] sm:$0xff]   ;;  %v388_v13 = vld [vmem:[%s508_s5 + $0x10] sm:$0xff]  }
   0x3   :  { %v33_v7 = vld [vmem:[%s506_s0] sm:$0xff]  ;;  %355 = vmatpush3.bf16.msra.mxu1 %v95_v5  ;;  %v48_v9 = vand.u32 %v46_v6, %v38_v2  ;;  %v389_v14 = vld [vmem:[%s508_s5 + $0x8] sm:$0xff]   ;;  %v391_v16 = vld [vmem:[%s509_s7 + $0x18] sm:$0xff]   ;;  %vm186_vm5 = vcmask 523264  }
   0x4   :  { %v35_v8 = vld [vmem:[%s507_s1] sm:$0xff]  ;;  %v34_v10 = vpack.c.bf16 %v33_v7, %v33_v7  ;;  %372 = vmatprep.subr.bf16.mxu1 %v395_v0  ;;  %v392_v17 = vld [vmem:[%s509_s7 + $0x10] sm:$0xff]   ;;  %v393_v31 = vld [vmem:[%s509_s7 + $0x8] sm:$0xff]  }
   0x5   :  { %v36_v12 = vpack.c.bf16 %v35_v8, %v35_v8  ;;  %349 = vmatpush3.bf16.msra.mxu0 %v48_v9  ;;  %v390_v15 = vld [vmem:[%s508_s5] sm:$0xff]  }
   0x6   :  { %357 = vmatmul.mubr.msk.bf16.vlgmr.msra.gmra.mxu1 %vm90_vm3, %v34_v10  ;;  %360 = vmatprep.subr.bf16.mxu0 %v395_v0  ;;  %v321_v20 = vld [vmem:[%s510_s4] ss:$0 sm:$0xff] }
   0x7   :  { %380 = vmatprep.mubr.msk.bf16.mxu1 %vm397_vm2, %v395_v0  ;;  %373 = vmatpush3.bf16.msra.mxu1 %v391_v16  ;;  %v394_v32 = vld [vmem:[%s509_s7] sm:$0xff]  }
   0x8   :  { %351 = vmatmul.mubr.msk.bf16.vlgmr.msra.gmra.mxu0 %vm39_vm4, %v36_v12  ;;  %374 = vmatprep.subr.bf16.mxu1 %v395_v0  ;;  %v322_v33 = vld [vmem:[%s511_s6] ss:$0 sm:$0xff] }
   0x9   :  { %361 = vmatpush3.bf16.msra.mxu0 %v387_v11  ;;  %368 = vmatprep.mubr.msk.bf16.mxu0 %vm397_vm2, %v395_v0  ;;  %v328_v41 = vld [vmem:[%s512_s8] ss:$0 sm:$0xff] }
   0xa   :  { %362 = vmatprep.subr.bf16.mxu0 %v395_v0 }
   0xb   :  { %375 = vmatpush3.bf16.msra.mxu1 %v392_v17 }
   0xc   :  { %376 = vmatprep.subr.bf16.mxu1 %v395_v0 }
   0xd   :  { %363 = vmatpush3.bf16.msra.mxu0 %v388_v13 }
   0xe   :  { %364 = vmatprep.subr.bf16.mxu0 %v395_v0 }
   0xf   :  { %377 = vmatpush3.bf16.msra.mxu1 %v393_v31 }
  0x10   :  { %378 = vmatprep.subr.bf16.mxu1 %v395_v0 }
  0x11   :  { %365 = vmatpush3.bf16.msra.mxu0 %v389_v14 }
  0x12   :  { %366 = vmatprep.subr.bf16.mxu0 %v395_v0 }
  0x13   :  { %379 = vmatpush3.bf16.msra.mxu1 %v394_v32 }
  0x15   :  { %367 = vmatpush3.bf16.msra.mxu0 %v390_v15 }
  0xc6   :  { %v131_v18 = vpop.f32.mrf.mxu1 }
  0xc8   :  { %v84_v19 = vpop.f32.mrf.mxu0  ;;  %v358_v21 = vpop.f32.mrf.mxu1 }
  0xc9   :  { %v132_v22 = vadd.f32 %v131_v18, %v84_v19 }
  0xca   :  { %v352_v23 = vpop.f32.mrf.mxu0  ;;  %v134_v24 = vpop.f32.mrf.mxu1 }
  0xcb   :  { %v144_v25 = vadd.f32 %v321_v20, %v132_v22 }
  0xcc   :  { %v87_v26 = vpop.f32.mrf.mxu0  ;;  %v359_v27 = vpop.f32.mrf.mxu1 }
  0xcd   :  { %v145_v28 = vmax.f32 %v144_v25, 0.0 }
  0xce   :  { %v353_v29 = vpop.f32.mrf.mxu0 }
  0xcf   :  { %v146_v30 = vpack.c.bf16 %v145_v28, %v145_v28 }
  0xd1   :  { %369 = vmatmul.mubr.msk.bf16.vlgmr.msra.gmra.mxu0 %vm186_vm5, %v146_v30 }
 0x191   :  { %v224_v34 = vpop.f32.mrf.mxu0 }
 0x192   :  { %v225_v35 = vadd.f32 %v322_v33, %v224_v34 }
 0x193   :  { %v370_v36 = vpop.f32.mrf.mxu0 }
 0x194   :  { %v230_v37 = vmax.f32 %v225_v35, 0.0 }
 0x195   :  { %v227_v38 = vpop.f32.mrf.mxu0 }
 0x196   :  { %v231_v39 = vpack.c.bf16 %v230_v37, %v230_v37 }
 0x197   :  { %v371_v40 = vpop.f32.mrf.mxu0 }
 0x198   :  { %381 = vmatmul.mubr.msk.bf16.vlgmr.msra.gmra.mxu1 %vm186_vm5, %v231_v39 }
 0x258   :  { %v308_v42 = vpop.f32.mrf.mxu1 }
 0x259   :  { %v309_v43 = vadd.f32 %v328_v41, %v308_v42 }
 0x25a   :  { %v382_v44 = vpop.f32.mrf.mxu1 }
 0x25b   :  { %314 = vst.msk [vmem:[%s513_s9] sm:$0xff] %vm90_vm3, %v309_v43 }
 0x25c   :  { %v311_v45 = vpop.f32.mrf.mxu1 }
 0x25e   :  { %v383_v46 = vpop.f32.mrf.mxu1 }

</bundles_post_ra>
